<compile_context>
chip_gen: v7x
topology: tpu7x:2x2x1
jax: 0.10.0
libtpu: 0.0.40
codegen_flags: <defaults>
</compile_context>

<pallas_src>
import functools

import jax
import jax.numpy as jnp
from jax.experimental import pallas as pl
from jax.experimental.pallas import tpu as pltpu


_VMEM_LIMIT = 32 * 1024 * 1024  # explicit; safe on v5e/v6e/v7x


def _fused_kernel(x_ref, o_ref):
    """Fast path: whole slab resident in VMEM -> single read, single write."""
    x = x_ref[...].astype(jnp.float32)
    m = jnp.max(x)
    e = jnp.exp(x - m)
    s = jnp.sum(e)
    o_ref[...] = (e * (1.0 / s)).astype(o_ref.dtype)


def _reduce_kernel(x_ref, m_out_ref, inv_out_ref, m_run, s_run, *,
                   total_rows, needs_mask):
    """Pass 1: per-lane running (max, exp-sum) over row tiles; finalize to
    scalar (global max, 1/global sum) broadcast into two (1,128) blocks."""
    t = pl.program_id(0)
    tile_rows = x_ref.shape[0]

    @pl.when(t == 0)
    def _init():
        m_run[...] = jnp.full(m_run.shape, -jnp.inf, dtype=jnp.float32)
        s_run[...] = jnp.zeros(s_run.shape, dtype=jnp.float32)
        m_out_ref[...] = jnp.zeros(m_out_ref.shape, dtype=jnp.float32)
        inv_out_ref[...] = jnp.zeros(inv_out_ref.shape, dtype=jnp.float32)

    x = x_ref[...].astype(jnp.float32)
    if needs_mask:
        # Last tile may overhang the slab: mask overhanging rows to -inf so
        # they contribute exp(-inf) = 0 to the sum and never win the max.
        row_ids = t * tile_rows + jax.lax.broadcasted_iota(jnp.int32, x.shape, 0)
        x = jnp.where(row_ids < total_rows, x, -jnp.inf)

    m_old = m_run[...]                                   # (1, lane)
    m_tile = jnp.max(x, axis=0, keepdims=True)           # (1, lane)
    m_new = jnp.maximum(m_old, m_tile)
    # Avoid (-inf) - (-inf) = nan for lanes that are still all -inf.
    m_sub = jnp.where(m_new == -jnp.inf, 0.0, m_new)
    alpha = jnp.exp(m_old - m_sub)                       # rescale old partial sum
    p = jnp.exp(x - m_sub)                               # EUP, elementwise
    s_run[...] = alpha * s_run[...] + jnp.sum(p, axis=0, keepdims=True)
    m_run[...] = m_new

    @pl.when(t == pl.num_programs(0) - 1)
    def _finalize():
        m_vec = m_run[...]
        s_vec = s_run[...]
        m_g = jnp.max(m_vec)
        m_gs = jnp.where(m_g == -jnp.inf, 0.0, m_g)
        s_g = jnp.sum(s_vec * jnp.exp(m_vec - m_gs))
        inv = 1.0 / s_g                                  # exact: keeps sum(out)==1 tight
        m_out_ref[...] = jnp.full(m_out_ref.shape, m_gs, dtype=jnp.float32)
        inv_out_ref[...] = jnp.full(inv_out_ref.shape, inv, dtype=jnp.float32)


def _normalize_kernel(m_ref, inv_ref, x_ref, o_ref):
    """Pass 2: out = exp(x - global_max) * (1/global_sum) for one row tile."""
    m = m_ref[0, 0]                                      # scalar read, once per tile
    inv = inv_ref[0, 0]
    x = x_ref[...].astype(jnp.float32)
    o_ref[...] = (jnp.exp(x - m) * inv).astype(o_ref.dtype)


def softmax_stable(x, *, tile_elems=256 * 1024):
    """Global stable softmax over all elements of x (any shape), PyTorch-style."""
    orig_shape = x.shape
    n = x.size
    flat = x.reshape(-1)

    # Rare ragged case: flat size not a multiple of 128 lanes. Pad with -inf
    # (exp(-inf)=0, never wins the max). Typical NCHW sizes never hit this.
    pad = (-n) % 128
    if pad:
        # TODO(synk): this tail-pad copies; kernel-side lane masking would avoid it.
        flat = jnp.pad(flat, (0, pad), constant_values=-jnp.inf)
    n_pad = n + pad

    # Widest lane dim (multiple of 128) dividing the flat size.
    lane = 128
    for cand in (4096, 2048, 1024, 512, 256):
        if n_pad % cand == 0:
            lane = cand
            break
    rows = n_pad // lane
    slab = flat.reshape(rows, lane)

    # Row tile: ~tile_elems elements (~1 MiB f32) per pipeline buffer, rounded
    # to the dtype's sublane multiple.
    itemsize = jnp.dtype(x.dtype).itemsize
    sublane = {4: 8, 2: 16, 1: 32}.get(itemsize, 8)
    tile_rows = max(sublane, (tile_elems // lane) // sublane * sublane)

    # ---- Fast path: single fused kernel when the whole slab fits one block ---
    if tile_rows >= rows:
        out_slab = pl.pallas_call(
            _fused_kernel,
            out_shape=jax.ShapeDtypeStruct((rows, lane), x.dtype),
            in_specs=[pl.BlockSpec((rows, lane), lambda: (0, 0))],
            out_specs=pl.BlockSpec((rows, lane), lambda: (0, 0)),
            compiler_params=pltpu.CompilerParams(vmem_limit_bytes=_VMEM_LIMIT),
            cost_estimate=pl.CostEstimate(
                flops=4 * n_pad, transcendentals=n_pad,
                bytes_accessed=2 * n_pad * itemsize),
        )(slab)
    else:
        num_tiles = pl.cdiv(rows, tile_rows)
        needs_mask = (rows % tile_rows) != 0

        stat_shape = jax.ShapeDtypeStruct((1, 128), jnp.float32)
        stat_spec = pl.BlockSpec((1, 128), lambda t: (0, 0))
        slab_spec = pl.BlockSpec((tile_rows, lane), lambda t: (t, 0))

        # ---- Pass 1: running per-lane stats -> scalar (max, 1/sum) ----------
        m_g, inv_g = pl.pallas_call(
            functools.partial(_reduce_kernel, total_rows=rows,
                              needs_mask=needs_mask),
            out_shape=(stat_shape, stat_shape),
            grid_spec=pltpu.PrefetchScalarGridSpec(
                num_scalar_prefetch=0,
                grid=(num_tiles,),
                in_specs=[slab_spec],
                out_specs=[stat_spec, stat_spec],
                scratch_shapes=[pltpu.VMEM((1, lane), jnp.float32),
                                pltpu.VMEM((1, lane), jnp.float32)],
            ),
            compiler_params=pltpu.CompilerParams(
                dimension_semantics=("arbitrary",),   # carried running stats
                vmem_limit_bytes=_VMEM_LIMIT,
            ),
            cost_estimate=pl.CostEstimate(
                flops=4 * n_pad, transcendentals=n_pad,
                bytes_accessed=n_pad * itemsize),
        )(slab)

        # ---- Pass 2: normalize each tile with the global (max, 1/sum) -------
        out_slab = pl.pallas_call(
            _normalize_kernel,
            out_shape=jax.ShapeDtypeStruct((rows, lane), x.dtype),
            grid_spec=pltpu.PrefetchScalarGridSpec(
                num_scalar_prefetch=0,
                grid=(num_tiles,),
                in_specs=[stat_spec, stat_spec, slab_spec],
                out_specs=slab_spec,
            ),
            compiler_params=pltpu.CompilerParams(
                dimension_semantics=("parallel",),    # independent tiles (v7x 2 TCs)
                vmem_limit_bytes=_VMEM_LIMIT,
            ),
            cost_estimate=pl.CostEstimate(
                flops=2 * n_pad, transcendentals=n_pad,
                bytes_accessed=2 * n_pad * itemsize),
        )(m_g, inv_g, slab)

    out_flat = out_slab.reshape(-1)
    if pad:
        out_flat = out_flat[:n]
    return out_flat.reshape(orig_shape)


def _reference(x):
    e = jnp.exp(x - jnp.max(x))
    return e / jnp.sum(e)


if __name__ == "__main__":
    key = jax.random.PRNGKey(0)
    k1, k2 = jax.random.split(key)

    # 1) Typical small NCHW input: single fused fast path.
    x1 = jax.random.normal(k1, (2, 4, 16, 16), dtype=jnp.float32)
    out1 = jax.block_until_ready(softmax_stable(x1))
    ref1 = _reference(x1)
    assert out1.shape == x1.shape and out1.dtype == x1.dtype
    assert jnp.allclose(out1, ref1, atol=1e-6, rtol=1e-6)
    assert jnp.allclose(jnp.sum(out1), 1.0, atol=2e-5)

    # 2) Small input forced through the multi-tile pipelined path with a ragged
    #    last tile (exercises the flash-style combine + in-kernel row masking).
    x2 = jax.random.normal(k2, (3, 5, 16, 16), dtype=jnp.float32)
    out2 = jax.block_until_ready(softmax_stable(x2, tile_elems=2048))
    ref2 = _reference(x2)
    assert out2.shape == x2.shape and out2.dtype == x2.dtype
    assert jnp.allclose(out2, ref2, atol=1e-6, rtol=1e-6)
    assert jnp.allclose(jnp.sum(out2), 1.0, atol=2e-5)

    print("KERNEL_OK")
</pallas_src>

<mosaic_0001>
module attributes {stable_mosaic.version = 11 : i64} {
  func.func @_fused_kernel(%arg0: memref<1x2048xf32, #tpu.memory_space<vmem>>, %arg1: memref<1x2048xf32, #tpu.memory_space<vmem>>) attributes {dimension_semantics = [], scalar_prefetch = 0 : i64, scratch_operands = 0 : i64, tpu.core_type = #tpu.core_type<tc>} {
    %c0 = arith.constant 0 : index
    %c0_0 = arith.constant 0 : index
    %0 = vector.load %arg0[%c0, %c0_0] : memref<1x2048xf32, #tpu.memory_space<vmem>>, vector<1x2048xf32>
    %1 = vector.shape_cast %0 : vector<1x2048xf32> to vector<1x1x2048xf32>
    %cst = arith.constant dense<0xFF800000> : vector<1xf32>
    %2 = vector.multi_reduction <maximumf>, %1, %cst [1, 2] : vector<1x1x2048xf32> to vector<1xf32>
    %3 = vector.shape_cast %2 : vector<1xf32> to vector<1x1x1xf32>
    %4 = vector.extract %3[0, 0, 0] : f32 from vector<1x1x1xf32>
    %5 = vector.broadcast %4 : f32 to vector<1x2048xf32>
    %6 = arith.subf %0, %5 : vector<1x2048xf32>
    %7 = math.exp %6 : vector<1x2048xf32>
    %8 = vector.shape_cast %7 : vector<1x2048xf32> to vector<1x1x2048xf32>
    %cst_1 = arith.constant dense<0.000000e+00> : vector<1xf32>
    %9 = vector.multi_reduction <add>, %8, %cst_1 [1, 2] : vector<1x1x2048xf32> to vector<1xf32>
    %10 = vector.shape_cast %9 : vector<1xf32> to vector<1x1x1xf32>
    %11 = vector.extract %10[0, 0, 0] : f32 from vector<1x1x1xf32>
    %cst_2 = arith.constant 1.000000e+00 : f32
    %12 = arith.divf %cst_2, %11 : f32
    %13 = vector.broadcast %12 : f32 to vector<1x2048xf32>
    %14 = arith.mulf %7, %13 : vector<1x2048xf32>
    %c0_3 = arith.constant 0 : index
    %c0_4 = arith.constant 0 : index
    %15 = vector.load %arg1[%c0_3, %c0_4] : memref<1x2048xf32, #tpu.memory_space<vmem>>, vector<1x2048xf32>
    tpu.vector_store %arg1[%c0_3, %c0_4], %14 {strides = array<i32>} : memref<1x2048xf32, #tpu.memory_space<vmem>>, vector<1x2048xf32>,
    return
  }
}

</mosaic_0001>

<bundles_post_ra>
// kernel: tpu_custom_call.1
= control target key start
LH: loop header
LB: loop body
LE: loop exit
PB: predicated region body
PF: predicated region fallthrough
CT: control target
= control target key end

     0   :  { %6 = vsyncpa [#allocation3], 0  ;;  %s498_s0 = inlined_call_operand.hbm [shape: f32[1,2048], index: 0, kind: input, shape index: {}]   ;;  %s499_s1 = inlined_call_operand.hbm [shape: f32[1,2048], index: 1, kind: output, shape index: {}]  }
   0x1   :  { %7 = vsyncpa [#allocation4], 0  ;;  %s360_s6 = smov [#allocation2]   ;;  %s312_s10 = scalar_lea.hbm %s498_s0, 256 }
   0x2   :  { %s14_s7 = sshll.u32 %s360_s6, 4  ;;  %p313_p0 = scmp.ne.s32.totalorder %s498_s0, %s312_s10  ;;  %s15_s7 = int_to_ptr.vmem [resolvable:$true] %s14_s7 }
   0x3   :  { %p316_p1 = scmp.lt.u32.totalorder %s312_s10, %s498_s0 }
   0x5   :  { %p318_p2 = pnand %p316_p1, %p313_p0 }
   0x7   :  { %321 = shalt.err (!%p318_p2)
}
   0x8   :  { %s322_s15 = scalar_lea.vmem %s15_s7, 256  ;;  %p327_p4 = scmp.lt.s32.totalorder %s15_s7, %s15_s7 }
   0x9   :  { %p323_p3 = scmp.ne.s32.totalorder %s15_s7, %s322_s15  ;;  %p328_p5 = scmp.lt.s32.totalorder %s322_s15, %s322_s15 }
   0xb   :  { %p329_p6 = por %p328_p5, %p327_p4 }
   0xd   :  { %p330_p7 = pnand %p329_p6, %p323_p3 }
   0xf   :  { %333 = shalt.err (!%p330_p7)
}
  0x10   :  { %17 = dma.hbm_to_vmem [thread:$0]  %s498_s0, 256, %s15_s7, [#allocation3]  }
  0x11   :  { %356 = dma.done.wait [#allocation3], 256  }
  0x12   :  { %357 = vsyncadd [#allocation3], 4294967040  ;;  %v25_v0 = vlaneseq  ;;  %v21_v10 = vld [vmem:[#allocation2] sm:$0xff]  ;;  %v400_v11 = vld [vmem:[#allocation2 + $0x8] sm:$0xff]  ;;  %vm105_vm0 = vcmask 1040384   ;;  %s361_s19 = smov [#allocation5]  }
  0x13   :  { %s289_s20 = sshll.u32 %s361_s19, 4  ;;  %s290_s20 = int_to_ptr.vmem [resolvable:$true] %s289_s20 }
  0x14   :  { %v26_v1 = vshrl.u32 %v25_v0, 7  ;;  %s334_s22 = scalar_lea.vmem %s290_s20, 256  ;;  %p339_p9 = scmp.lt.s32.totalorder %s290_s20, %s290_s20 }
  0x15   :  { %p335_p8 = scmp.ne.s32.totalorder %s290_s20, %s334_s22  ;;  %p340_p10 = scmp.lt.s32.totalorder %s334_s22, %s334_s22 }
  0x16   :  { %v384_v2 = vsub.s32 0, %v26_v1  ;;  %v386_v3 = vsub.s32 1, %v26_v1  ;;  %v388_v4 = vsub.s32 2, %v26_v1  ;;  %v390_v5 = vsub.s32 3, %v26_v1 }
  0x17   :  { %v392_v6 = vsub.s32 4, %v26_v1  ;;  %v394_v7 = vsub.s32 5, %v26_v1  ;;  %v396_v8 = vsub.s32 6, %v26_v1  ;;  %v398_v9 = vsub.s32 7, %v26_v1  ;;  %p341_p11 = por %p340_p10, %p339_p9 }
  0x18   :  { %v28_v12 = vrot.slane %v21_v10, %v384_v2  ;;  %v32_v13 = vrot.slane %v21_v10, %v386_v3  ;;  %v36_v14 = vrot.slane %v21_v10, %v388_v4  ;;  %v40_v15 = vrot.slane %v21_v10, %v390_v5 }
  0x19   :  { %v44_v16 = vrot.slane %v21_v10, %v392_v6  ;;  %v48_v17 = vrot.slane %v21_v10, %v394_v7  ;;  %v52_v18 = vrot.slane %v21_v10, %v396_v8  ;;  %v56_v19 = vrot.slane %v21_v10, %v398_v9  ;;  %p342_p12 = pnand %p341_p11, %p335_p8 }
  0x1a   :  { %v60_v20 = vrot.slane %v400_v11, %v384_v2  ;;  %v64_v21 = vrot.slane %v400_v11, %v386_v3  ;;  %v68_v22 = vrot.slane %v400_v11, %v388_v4  ;;  %v72_v23 = vrot.slane %v400_v11, %v390_v5 }
  0x1b   :  { %v76_v24 = vrot.slane %v400_v11, %v392_v6  ;;  %v80_v25 = vrot.slane %v400_v11, %v394_v7  ;;  %v84_v26 = vrot.slane %v400_v11, %v396_v8  ;;  %v88_v27 = vrot.slane %v400_v11, %v398_v9 }
  0x1c   :  { %v106_v28 = vsel %vm105_vm0, %v28_v12, -inf  ;;  %v107_v29 = vsel %vm105_vm0, %v32_v13, -inf  ;;  %v108_v30 = vsel %vm105_vm0, %v36_v14, -inf  ;;  %v109_v31 = vsel %vm105_vm0, %v40_v15, -inf }
  0x1d   :  { %v110_v32 = vsel %vm105_vm0, %v44_v16, -inf  ;;  %v112_v33 = vsel %vm105_vm0, %v48_v17, -inf  ;;  %v114_v34 = vsel %vm105_vm0, %v52_v18, -inf  ;;  %v116_v35 = vsel %vm105_vm0, %v56_v19, -inf }
  0x1e   :  { %v111_v36 = vmax.f32 %v106_v28, %v110_v32  ;;  %v113_v37 = vmax.f32 %v107_v29, %v112_v33  ;;  %v115_v38 = vmax.f32 %v108_v30, %v114_v34  ;;  %v117_v39 = vmax.f32 %v109_v31, %v116_v35 }
  0x1f   :  { %v118_v40 = vsel %vm105_vm0, %v60_v20, -inf  ;;  %v120_v41 = vsel %vm105_vm0, %v64_v21, -inf  ;;  %v122_v42 = vsel %vm105_vm0, %v68_v22, -inf  ;;  %v124_v43 = vsel %vm105_vm0, %v72_v23, -inf }
  0x20   :  { %v119_v44 = vmax.f32 %v111_v36, %v118_v40  ;;  %v121_v45 = vmax.f32 %v113_v37, %v120_v41  ;;  %v123_v46 = vmax.f32 %v115_v38, %v122_v42  ;;  %v125_v47 = vmax.f32 %v117_v39, %v124_v43 }
  0x21   :  { %v126_v48 = vsel %vm105_vm0, %v76_v24, -inf  ;;  %v128_v49 = vsel %vm105_vm0, %v80_v25, -inf  ;;  %v130_v50 = vsel %vm105_vm0, %v84_v26, -inf  ;;  %v132_v51 = vsel %vm105_vm0, %v88_v27, -inf }
  0x22   :  { %v127_v52 = vmax.f32 %v119_v44, %v126_v48  ;;  %v129_v53 = vmax.f32 %v121_v45, %v128_v49  ;;  %v131_v54 = vmax.f32 %v123_v46, %v130_v50  ;;  %v133_v55 = vmax.f32 %v125_v47, %v132_v51 }
  0x24   :  { %v134_v56 = vmax.f32 %v127_v52, %v129_v53  ;;  %v135_v57 = vmax.f32 %v131_v54, %v133_v55 }
  0x26   :  { %v136_v58 = vmax.f32 %v134_v56, %v135_v57 }
  0x28   :  { %137 = vmax.xlane.f32.xlu0 %v136_v58 }
  0xb5   :  { %v138_v59 = vpop.xlane.xlu0 %137 }
  0xb6   :  { %v139_v60 = vrot.slane %v138_v59, 4 }
  0xb8   :  { %v140_v61 = vmax.f32 %v138_v59, %v139_v60 }
  0xba   :  { %v141_v62 = vrot.slane %v140_v61, 2 }
  0xbc   :  { %v142_v63 = vmax.f32 %v140_v61, %v141_v62 }
  0xbe   :  { %v143_v0 = vrot.slane %v142_v63, 1 }
  0xc0   :  { %v144_v1 = vmax.f32 %v142_v63, %v143_v0 }
  0xc2   :  { %298 = vpush %v144_v1 }
  0xf3   :  { %s299_s0 = spop %298 }
  0xf4   :  { %v146_v12 = vstv %s299_s0 }
  0xf5   :  { %v147_v13 = vsub.f32 %v21_v10, %v146_v12  ;;  %v148_v15 = vsub.f32 %v400_v11, %v146_v12 }
  0xf7   :  { %v149_v14 = vmul.f32 1.442695, %v147_v13  ;;  %v151_v16 = vmul.f32 1.442695, %v148_v15 }
  0xf9   :  { %306 = vpow2.f32 %v149_v14 }
  0xfa   :  { %308 = vpow2.f32 %v151_v16 }
 0x103   :  { %v443_v17 = vpop.eup %306 }
 0x104   :  { %v158_v18 = vrot.slane %v443_v17, %v384_v2  ;;  %v162_v19 = vrot.slane %v443_v17, %v386_v3  ;;  %v166_v20 = vrot.slane %v443_v17, %v388_v4  ;;  %v170_v10 = vrot.slane %v443_v17, %v390_v5  ;;  %v309_v31 = vpop.eup %308 }
 0x105   :  { %v174_v23 = vrot.slane %v443_v17, %v392_v6  ;;  %v178_v26 = vrot.slane %v443_v17, %v394_v7  ;;  %v182_v29 = vrot.slane %v443_v17, %v396_v8  ;;  %v186_v33 = vrot.slane %v443_v17, %v398_v9 }
 0x106   :  { %v235_v21 = vsel %vm105_vm0, %v158_v18, 0.0  ;;  %v236_v11 = vsel %vm105_vm0, %v162_v19, 0.0  ;;  %v238_v24 = vsel %vm105_vm0, %v166_v20, 0.0  ;;  %v240_v27 = vsel %vm105_vm0, %v170_v10, 0.0 }
 0x107   :  { %v237_v22 = vadd.f32 %v236_v11, %v235_v21  ;;  %v242_v30 = vsel %vm105_vm0, %v174_v23, 0.0  ;;  %v244_v34 = vsel %vm105_vm0, %v178_v26, 0.0  ;;  %v190_v36 = vrot.slane %v309_v31, %v384_v2 }
 0x108   :  { %v246_v37 = vsel %vm105_vm0, %v182_v29, 0.0  ;;  %v194_v39 = vrot.slane %v309_v31, %v386_v3  ;;  %v248_v40 = vsel %vm105_vm0, %v186_v33, 0.0  ;;  %v198_v42 = vrot.slane %v309_v31, %v388_v4 }
 0x109   :  { %v239_v25 = vadd.f32 %v238_v24, %v237_v22  ;;  %v250_v43 = vsel %vm105_vm0, %v190_v36, 0.0  ;;  %v202_v45 = vrot.slane %v309_v31, %v390_v5  ;;  %v206_v2 = vrot.slane %v309_v31, %v392_v6 }
 0x10a   :  { %v252_v46 = vsel %vm105_vm0, %v194_v39, 0.0  ;;  %v254_v48 = vsel %vm105_vm0, %v198_v42, 0.0  ;;  %v210_v3 = vrot.slane %v309_v31, %v394_v7  ;;  %v214_v4 = vrot.slane %v309_v31, %v396_v8 }
 0x10b   :  { %v241_v28 = vadd.f32 %v240_v27, %v239_v25  ;;  %v256_v50 = vsel %vm105_vm0, %v202_v45, 0.0  ;;  %v258_v52 = vsel %vm105_vm0, %v206_v2, 0.0  ;;  %v218_v5 = vrot.slane %v309_v31, %v398_v9 }
 0x10c   :  { %v260_v54 = vsel %vm105_vm0, %v210_v3, 0.0  ;;  %v262_v6 = vsel %vm105_vm0, %v214_v4, 0.0 }
 0x10d   :  { %v243_v32 = vadd.f32 %v242_v30, %v241_v28  ;;  %v264_v57 = vsel %vm105_vm0, %v218_v5, 0.0 }
 0x10f   :  { %v245_v35 = vadd.f32 %v244_v34, %v243_v32 }
 0x111   :  { %v247_v38 = vadd.f32 %v246_v37, %v245_v35 }
 0x113   :  { %v249_v41 = vadd.f32 %v248_v40, %v247_v38 }
 0x115   :  { %v251_v44 = vadd.f32 %v250_v43, %v249_v41 }
 0x117   :  { %v253_v47 = vadd.f32 %v252_v46, %v251_v44 }
 0x119   :  { %v255_v49 = vadd.f32 %v254_v48, %v253_v47 }
 0x11b   :  { %v257_v51 = vadd.f32 %v256_v50, %v255_v49 }
 0x11d   :  { %v259_v53 = vadd.f32 %v258_v52, %v257_v51 }
 0x11f   :  { %v261_v55 = vadd.f32 %v260_v54, %v259_v53 }
 0x121   :  { %v263_v56 = vadd.f32 %v262_v6, %v261_v55 }
 0x123   :  { %v265_v58 = vadd.f32 %v264_v57, %v263_v56 }
 0x125   :  { %266 = vadd.xlane.f32.xlu0 %v265_v58 }
 0x1b2   :  { %v267_v7 = vpop.xlane.xlu0 %266 }
 0x1b3   :  { %v268_v59 = vrot.slane %v267_v7, 4 }
 0x1b5   :  { %v269_v60 = vadd.f32 %v268_v59, %v267_v7 }
 0x1b7   :  { %v270_v61 = vrot.slane %v269_v60, 2 }
 0x1b9   :  { %v271_v8 = vadd.f32 %v270_v61, %v269_v60 }
 0x1bb   :  { %v272_v62 = vrot.slane %v271_v8, 1 }
 0x1bd   :  { %v273_v63 = vadd.f32 %v272_v62, %v271_v8 }
 0x1bf   :  { %300 = vpush %v273_v63 }
 0x1f0   :  { %s301_s18 = spop %300 }
 0x1f1   :  { %v275_v9 = vstv %s301_s18 }
 0x1f2   :  { %310 = vrcp.f32 %v275_v9 }
 0x1fc   :  { %v311_v0 = vpop.eup %310 }
 0x1fd   :  { %302 = vpush %v311_v0 }
 0x22e   :  { %s303_s21 = spop %302 }
 0x22f   :  { %v278_v1 = vstv %s303_s21 }
 0x230   :  { %v279_v12 = vmul.f32 %v443_v17, %v278_v1  ;;  %v280_v13 = vmul.f32 %v309_v31, %v278_v1 }
 0x232   :  { %281 = vst [vmem:[#allocation5] sm:$0xff] %v279_v12  ;;  %282 = vst [vmem:[#allocation5 + $0x8] sm:$0xff] %v280_v13 }
 0x233   :  { %345 = shalt.err (!%p342_p12)
}
 0x234   :  { %s346_s25 = scalar_lea.hbm %s499_s1, 256 }
 0x235   :  { %p347_p13 = scmp.ne.s32.totalorder %s499_s1, %s346_s25  ;;  %p350_p0 = scmp.lt.u32.totalorder %s346_s25, %s499_s1 }
 0x237   :  { %p352_p1 = pnand %p350_p0, %p347_p13 }
 0x239   :  { %355 = shalt.err (!%p352_p1)
}
 0x23a   :  { %292 = dma.vmem_to_hbm [thread:$0]  %s290_s20, 256, %s499_s1, [#allocation4]  }
 0x23b   :  { %358 = dma.done.wait [#allocation4], 256  }
 0x23c   :  { %359 = vsyncadd [#allocation4], 4294967040 }
 0x23d   :  { %296 = vsyncpa [#allocation3], 1 }
 0x23e   :  { %297 = vsyncpa [#allocation4], 1 }

</bundles_post_ra>
